<compile_context>
chip_gen: v7x
topology: tpu7x:2x2x1
jax: 0.10.0
libtpu: 0.0.40
codegen_flags: <defaults>
</compile_context>

<pallas_src>
import functools

import jax
import jax.numpy as jnp
from jax.experimental import pallas as pl
from jax.experimental.pallas import tpu as pltpu


def _bce(p, y, binary_labels):
    # F.binary_cross_entropy semantics on probabilities, with PyTorch's log clamp
    # at -100.  binary_labels=True uses a single log (exact for hard {0,1} labels).
    if binary_labels:
        return -jnp.maximum(jnp.log(jnp.where(y > 0.5, p, 1.0 - p)), -100.0)
    logp = jnp.maximum(jnp.log(p), -100.0)
    log1mp = jnp.maximum(jnp.log(1.0 - p), -100.0)
    return -(y * logp + (1.0 - y) * log1mp)


def _loss_kernel(ts_ref, te_ref, tls_ref, tle_ref, m_ref,
                 as_ref, ae_ref, als_ref, ale_ref, ma_ref,
                 out_ref, *, lambd, pref, inv_role_cnt, binary_labels):
    mask = m_ref[...]                                         # (bt, seq_l)
    msum = jnp.sum(mask, axis=-1, keepdims=True)              # (bt, 1)
    # Guard: fully-padded rows (mask all zero) contribute 0 instead of NaN.
    inv_msum = jnp.where(msum > 0.0, 1.0 / msum, 0.0)

    # ---- trigger path: per-row masked mean of BCE(start) + BCE(end) ----
    trig_elem = (_bce(ts_ref[...], tls_ref[...], binary_labels)
                 + _bce(te_ref[...], tle_ref[...], binary_labels)) * mask
    trig_loss = jnp.sum(trig_elem, axis=-1, keepdims=True) * inv_msum      # (bt, 1)

    # ---- argument path: pos-pref weighted BCE / (mask_sum * role_cnt) ----
    als = als_ref[...]
    ale = ale_ref[...]
    w_s = 1.0 + (pref - 1.0) * als
    w_e = 1.0 + (pref - 1.0) * ale
    arg_elem = (w_s * _bce(as_ref[...], als, binary_labels)
                + w_e * _bce(ae_ref[...], ale, binary_labels)) * ma_ref[...]
    arg_loss = (jnp.sum(arg_elem, axis=-1, keepdims=True)
                * inv_msum) * inv_role_cnt                                  # (bt, 1)

    per_row = lambd * trig_loss + (1.0 - lambd) * arg_loss                  # (bt, 1)
    # One partial-loss scalar per grid step (4 B writeback per step).
    out_ref[0] = jnp.sum(per_row, axis=0, keepdims=True)                    # (1, 1)


def _round_up(x, m):
    return -(-x // m) * m


def _vmem_capacity_bytes():
    try:
        return int(pltpu.get_tpu_info().vmem_capacity_bytes)
    except Exception:
        return 64 * 1024 * 1024        # conservative fallback (v7x per-core VMEM)


def _choose_b_tile(bsz, seq_l, role_cnt, requested, input_budget_bytes):
    # f32 read bytes per batch row per step: 5*seq_l (trig+mask) + 5*seq_l*R (args+arg mask).
    bytes_per_row = 4 * 5 * seq_l * (1 + role_cnt)
    # Double-buffered input footprint must fit the budget.
    cap_rows = max(8, (input_budget_bytes // (2 * bytes_per_row)) // 8 * 8)
    bt = cap_rows if requested is None else min(int(requested), cap_rows)
    if bsz > 8:
        # Keep >= 2 parallel grid steps so v7x can use both TensorCores.
        bt = min(bt, _round_up(_round_up(bsz, 8) // 2, 8))
    bt = min(bt, _round_up(bsz, 8))
    return max(8, _round_up(bt, 8))


def jointee_mask_loss(trigger_start, trigger_end,
                      trigger_label_start, trigger_label_end,
                      argument_start, argument_end,
                      argument_label_start, argument_label_end,
                      mask, *, lambd=0.1, pref=2.0,
                      b_tile=None, binary_labels=False):
    f32 = jnp.float32
    bsz, seq_l, _ = trigger_start.shape
    role_cnt = argument_start.shape[-1]
    lanes = seq_l * role_cnt

    vmem_cap = _vmem_capacity_bytes()
    vmem_limit = min(vmem_cap * 3 // 4, 96 * 1024 * 1024)
    b_tile = _choose_b_tile(bsz, seq_l, role_cnt, b_tile,
                            input_budget_bytes=int(vmem_cap * 0.45))
    n_steps = -(-bsz // b_tile)
    bsz_p = n_steps * b_tile

    # ---- layout-free reshapes only (seq_l / seq_l*R are already lane-dense) ----
    def trig2d(x):
        return x.reshape(bsz, seq_l).astype(f32)

    def arg2d(x):
        return x.reshape(bsz, lanes).astype(f32)

    mask2d = mask.reshape(bsz, seq_l).astype(f32)
    # Pre-expanded argument mask: each mask value repeated role_cnt times per token,
    # matching the (bsz, seq_l, R) -> (bsz, seq_l*R) reshape of the argument tensors.
    mask_arg = jnp.repeat(mask2d, role_cnt, axis=1)

    inputs = [trig2d(trigger_start), trig2d(trigger_end),
              trig2d(trigger_label_start), trig2d(trigger_label_end),
              mask2d,
              arg2d(argument_start), arg2d(argument_end),
              arg2d(argument_label_start), arg2d(argument_label_end),
              mask_arg]

    if bsz_p != bsz:
        pad = bsz_p - bsz
        inputs = [jnp.pad(x, ((0, pad), (0, 0))) for x in inputs]

    trig_spec = pl.BlockSpec((b_tile, seq_l), lambda i: (i, 0))
    arg_spec = pl.BlockSpec((b_tile, lanes), lambda i: (i, 0))

    n_pred = bsz_p * 2 * (seq_l + lanes)            # start+end, trigger + argument
    cost = pl.CostEstimate(
        flops=int(12 * n_pred),
        transcendentals=int((1 if binary_labels else 2) * n_pred + bsz_p),
        bytes_accessed=int(4 * bsz_p * 5 * (seq_l + lanes) + 4 * n_steps))

    kernel = functools.partial(
        _loss_kernel, lambd=float(lambd), pref=float(pref),
        inv_role_cnt=1.0 / float(role_cnt), binary_labels=bool(binary_labels))

    out = pl.pallas_call(
        kernel,
        out_shape=jax.ShapeDtypeStruct((n_steps, 1, 1), f32),
        grid_spec=pltpu.PrefetchScalarGridSpec(
            num_scalar_prefetch=0,
            grid=(n_steps,),
            in_specs=[trig_spec] * 5 + [arg_spec] * 5,
            out_specs=pl.BlockSpec((1, 1, 1), lambda i: (i, 0, 0)),
        ),
        compiler_params=pltpu.CompilerParams(
            dimension_semantics=("parallel",),
            vmem_limit_bytes=int(vmem_limit)),
        cost_estimate=cost,
    )(*inputs)

    # Tiny final reduction over per-step partial losses (padded rows are 0).
    return jnp.sum(out)


def _reference(ts, te, tls, tle, as_, ae, als, ale, mask, lambd=0.1, pref=2.0):
    # Pure-JAX reference mirroring the PyTorch forward exactly.
    m = mask[..., None].astype(jnp.float32)             # (bsz, seq_l, 1)
    msum = jnp.sum(m, axis=(1, 2))                      # (bsz,)
    role_cnt = as_.shape[-1]

    trig_s = jnp.sum(_bce(ts, tls, False) * m, axis=(1, 2)) / msum
    trig_e = jnp.sum(_bce(te, tle, False) * m, axis=(1, 2)) / msum
    trigger_loss = jnp.sum(trig_s) + jnp.sum(trig_e)

    w_s = 1.0 + (pref - 1.0) * als
    w_e = 1.0 + (pref - 1.0) * ale
    arg_s = jnp.sum(w_s * _bce(as_, als, False) * m, axis=(1, 2)) / (msum * role_cnt)
    arg_e = jnp.sum(w_e * _bce(ae, ale, False) * m, axis=(1, 2)) / (msum * role_cnt)
    argument_loss = jnp.sum(arg_s) + jnp.sum(arg_e)

    return lambd * trigger_loss + (1.0 - lambd) * argument_loss


if __name__ == "__main__":
    key = jax.random.PRNGKey(0)
    bsz, seq_l, role_cnt = 6, 16, 4

    ks = jax.random.split(key, 8)
    # Predictions are probabilities in (0, 1); labels are {0, 1} floats.
    trigger_start = jax.nn.sigmoid(jax.random.normal(ks[0], (bsz, seq_l, 1), jnp.float32))
    trigger_end = jax.nn.sigmoid(jax.random.normal(ks[1], (bsz, seq_l, 1), jnp.float32))
    trigger_label_start = jax.random.bernoulli(ks[2], 0.3, (bsz, seq_l, 1)).astype(jnp.float32)
    trigger_label_end = jax.random.bernoulli(ks[3], 0.3, (bsz, seq_l, 1)).astype(jnp.float32)
    argument_start = jax.nn.sigmoid(jax.random.normal(ks[4], (bsz, seq_l, role_cnt), jnp.float32))
    argument_end = jax.nn.sigmoid(jax.random.normal(ks[5], (bsz, seq_l, role_cnt), jnp.float32))
    argument_label_start = jax.random.bernoulli(ks[6], 0.2, (bsz, seq_l, role_cnt)).astype(jnp.float32)
    argument_label_end = jax.random.bernoulli(ks[7], 0.2, (bsz, seq_l, role_cnt)).astype(jnp.float32)
    # mask: first tokens valid, rest padding
    lengths = jnp.array([[16], [12], [9], [16], [5], [1]])
    mask = (jnp.arange(seq_l)[None, :] < lengths).astype(jnp.float32)

    args = (trigger_start, trigger_end, trigger_label_start, trigger_label_end,
            argument_start, argument_end, argument_label_start, argument_label_end,
            mask)

    ref = _reference(*args)

    # Soft-label (two-log) path — exact F.binary_cross_entropy semantics.
    loss_soft = jax.block_until_ready(jointee_mask_loss(*args, binary_labels=False))
    # Hard-label (single-log) path — exact for {0,1} labels, halves EUP work.
    loss_bin = jax.block_until_ready(jointee_mask_loss(*args, binary_labels=True))

    assert jnp.allclose(loss_soft, ref, rtol=1e-5, atol=1e-5), (loss_soft, ref)
    assert jnp.allclose(loss_bin, ref, rtol=1e-5, atol=1e-5), (loss_bin, ref)
    print("KERNEL_OK")
</pallas_src>

<mosaic_0001>
module attributes {stable_mosaic.version = 11 : i64} {
  func.func @_loss_kernel(%arg0: i32, %arg1: memref<8x16xf32, #tpu.memory_space<vmem>>, %arg2: memref<8x16xf32, #tpu.memory_space<vmem>>, %arg3: memref<8x16xf32, #tpu.memory_space<vmem>>, %arg4: memref<8x16xf32, #tpu.memory_space<vmem>>, %arg5: memref<8x16xf32, #tpu.memory_space<vmem>>, %arg6: memref<8x64xf32, #tpu.memory_space<vmem>>, %arg7: memref<8x64xf32, #tpu.memory_space<vmem>>, %arg8: memref<8x64xf32, #tpu.memory_space<vmem>>, %arg9: memref<8x64xf32, #tpu.memory_space<vmem>>, %arg10: memref<8x64xf32, #tpu.memory_space<vmem>>, %arg11: memref<1x1x1xf32, #tpu.memory_space<vmem>>) attributes {dimension_semantics = [#tpu.dimension_semantics<parallel>], iteration_bounds = array<i64: 1>, scalar_prefetch = 0 : i64, scratch_operands = 0 : i64, tpu.core_type = #tpu.core_type<tc>, window_params = [{transform_indices = @transform_0, window_bounds = array<i64: 8, 16>}, {transform_indices = @transform_1, window_bounds = array<i64: 8, 16>}, {transform_indices = @transform_2, window_bounds = array<i64: 8, 16>}, {transform_indices = @transform_3, window_bounds = array<i64: 8, 16>}, {transform_indices = @transform_4, window_bounds = array<i64: 8, 16>}, {transform_indices = @transform_5, window_bounds = array<i64: 8, 64>}, {transform_indices = @transform_6, window_bounds = array<i64: 8, 64>}, {transform_indices = @transform_7, window_bounds = array<i64: 8, 64>}, {transform_indices = @transform_8, window_bounds = array<i64: 8, 64>}, {transform_indices = @transform_9, window_bounds = array<i64: 8, 64>}, {transform_indices = @transform_10, window_bounds = array<i64: 1, 1, 1>}]} {
    %c0 = arith.constant 0 : index
    %c0_0 = arith.constant 0 : index
    %0 = vector.load %arg5[%c0, %c0_0] : memref<8x16xf32, #tpu.memory_space<vmem>>, vector<8x16xf32>
    %cst = arith.constant dense<0.000000e+00> : vector<8xf32>
    %1 = vector.multi_reduction <add>, %0, %cst [1] : vector<8x16xf32> to vector<8xf32>
    %2 = vector.shape_cast %1 : vector<8xf32> to vector<8x1xf32>
    %cst_1 = arith.constant 0.000000e+00 : f32
    %3 = vector.broadcast %cst_1 : f32 to vector<8x1xf32>
    %4 = arith.cmpf ogt, %2, %3 : vector<8x1xf32>
    %cst_2 = arith.constant 1.000000e+00 : f32
    %5 = vector.broadcast %cst_2 : f32 to vector<8x1xf32>
    %6 = arith.divf %5, %2 : vector<8x1xf32>
    %cst_3 = arith.constant 0.000000e+00 : f32
    %7 = vector.broadcast %cst_3 : f32 to vector<8x1xf32>
    %8 = arith.select %4, %6, %7 : vector<8x1xi1>, vector<8x1xf32>
    %c0_4 = arith.constant 0 : index
    %c0_5 = arith.constant 0 : index
    %9 = vector.load %arg1[%c0_4, %c0_5] : memref<8x16xf32, #tpu.memory_space<vmem>>, vector<8x16xf32>
    %c0_6 = arith.constant 0 : index
    %c0_7 = arith.constant 0 : index
    %10 = vector.load %arg3[%c0_6, %c0_7] : memref<8x16xf32, #tpu.memory_space<vmem>>, vector<8x16xf32>
    %11 = math.log %9 : vector<8x16xf32>
    %cst_8 = arith.constant -1.000000e+02 : f32
    %12 = vector.broadcast %cst_8 : f32 to vector<8x16xf32>
    %13 = arith.maximumf %11, %12 : vector<8x16xf32>
    %cst_9 = arith.constant 1.000000e+00 : f32
    %14 = vector.broadcast %cst_9 : f32 to vector<8x16xf32>
    %15 = arith.subf %14, %9 : vector<8x16xf32>
    %16 = math.log %15 : vector<8x16xf32>
    %cst_10 = arith.constant -1.000000e+02 : f32
    %17 = vector.broadcast %cst_10 : f32 to vector<8x16xf32>
    %18 = arith.maximumf %16, %17 : vector<8x16xf32>
    %19 = arith.mulf %10, %13 : vector<8x16xf32>
    %cst_11 = arith.constant 1.000000e+00 : f32
    %20 = vector.broadcast %cst_11 : f32 to vector<8x16xf32>
    %21 = arith.subf %20, %10 : vector<8x16xf32>
    %22 = arith.mulf %21, %18 : vector<8x16xf32>
    %23 = arith.addf %19, %22 : vector<8x16xf32>
    %cst_12 = arith.constant 0.000000e+00 : f32
    %24 = vector.broadcast %cst_12 : f32 to vector<8x16xf32>
    %25 = arith.subf %24, %23 : vector<8x16xf32>
    %c0_13 = arith.constant 0 : index
    %c0_14 = arith.constant 0 : index
    %26 = vector.load %arg2[%c0_13, %c0_14] : memref<8x16xf32, #tpu.memory_space<vmem>>, vector<8x16xf32>
    %c0_15 = arith.constant 0 : index
    %c0_16 = arith.constant 0 : index
    %27 = vector.load %arg4[%c0_15, %c0_16] : memref<8x16xf32, #tpu.memory_space<vmem>>, vector<8x16xf32>
    %28 = math.log %26 : vector<8x16xf32>
    %cst_17 = arith.constant -1.000000e+02 : f32
    %29 = vector.broadcast %cst_17 : f32 to vector<8x16xf32>
    %30 = arith.maximumf %28, %29 : vector<8x16xf32>
    %cst_18 = arith.constant 1.000000e+00 : f32
    %31 = vector.broadcast %cst_18 : f32 to vector<8x16xf32>
    %32 = arith.subf %31, %26 : vector<8x16xf32>
    %33 = math.log %32 : vector<8x16xf32>
    %cst_19 = arith.constant -1.000000e+02 : f32
    %34 = vector.broadcast %cst_19 : f32 to vector<8x16xf32>
    %35 = arith.maximumf %33, %34 : vector<8x16xf32>
    %36 = arith.mulf %27, %30 : vector<8x16xf32>
    %cst_20 = arith.constant 1.000000e+00 : f32
    %37 = vector.broadcast %cst_20 : f32 to vector<8x16xf32>
    %38 = arith.subf %37, %27 : vector<8x16xf32>
    %39 = arith.mulf %38, %35 : vector<8x16xf32>
    %40 = arith.addf %36, %39 : vector<8x16xf32>
    %cst_21 = arith.constant 0.000000e+00 : f32
    %41 = vector.broadcast %cst_21 : f32 to vector<8x16xf32>
    %42 = arith.subf %41, %40 : vector<8x16xf32>
    %43 = arith.addf %25, %42 : vector<8x16xf32>
    %44 = arith.mulf %43, %0 : vector<8x16xf32>
    %cst_22 = arith.constant dense<0.000000e+00> : vector<8xf32>
    %45 = vector.multi_reduction <add>, %44, %cst_22 [1] : vector<8x16xf32> to vector<8xf32>
    %46 = vector.shape_cast %45 : vector<8xf32> to vector<8x1xf32>
    %47 = arith.mulf %46, %8 : vector<8x1xf32>
    %c0_23 = arith.constant 0 : index
    %c0_24 = arith.constant 0 : index
    %48 = vector.load %arg8[%c0_23, %c0_24] : memref<8x64xf32, #tpu.memory_space<vmem>>, vector<8x64xf32>
    %c0_25 = arith.constant 0 : index
    %c0_26 = arith.constant 0 : index
    %49 = vector.load %arg9[%c0_25, %c0_26] : memref<8x64xf32, #tpu.memory_space<vmem>>, vector<8x64xf32>
    %cst_27 = arith.constant 1.000000e+00 : f32
    %50 = vector.broadcast %cst_27 : f32 to vector<8x64xf32>
    %51 = arith.mulf %50, %48 : vector<8x64xf32>
    %cst_28 = arith.constant 1.000000e+00 : f32
    %52 = vector.broadcast %cst_28 : f32 to vector<8x64xf32>
    %53 = arith.addf %52, %51 : vector<8x64xf32>
    %cst_29 = arith.constant 1.000000e+00 : f32
    %54 = vector.broadcast %cst_29 : f32 to vector<8x64xf32>
    %55 = arith.mulf %54, %49 : vector<8x64xf32>
    %cst_30 = arith.constant 1.000000e+00 : f32
    %56 = vector.broadcast %cst_30 : f32 to vector<8x64xf32>
    %57 = arith.addf %56, %55 : vector<8x64xf32>
    %c0_31 = arith.constant 0 : index
    %c0_32 = arith.constant 0 : index
    %58 = vector.load %arg6[%c0_31, %c0_32] : memref<8x64xf32, #tpu.memory_space<vmem>>, vector<8x64xf32>
    %59 = math.log %58 : vector<8x64xf32>
    %cst_33 = arith.constant -1.000000e+02 : f32
    %60 = vector.broadcast %cst_33 : f32 to vector<8x64xf32>
    %61 = arith.maximumf %59, %60 : vector<8x64xf32>
    %cst_34 = arith.constant 1.000000e+00 : f32
    %62 = vector.broadcast %cst_34 : f32 to vector<8x64xf32>
    %63 = arith.subf %62, %58 : vector<8x64xf32>
    %64 = math.log %63 : vector<8x64xf32>
    %cst_35 = arith.constant -1.000000e+02 : f32
    %65 = vector.broadcast %cst_35 : f32 to vector<8x64xf32>
    %66 = arith.maximumf %64, %65 : vector<8x64xf32>
    %67 = arith.mulf %48, %61 : vector<8x64xf32>
    %cst_36 = arith.constant 1.000000e+00 : f32
    %68 = vector.broadcast %cst_36 : f32 to vector<8x64xf32>
    %69 = arith.subf %68, %48 : vector<8x64xf32>
    %70 = arith.mulf %69, %66 : vector<8x64xf32>
    %71 = arith.addf %67, %70 : vector<8x64xf32>
    %cst_37 = arith.constant 0.000000e+00 : f32
    %72 = vector.broadcast %cst_37 : f32 to vector<8x64xf32>
    %73 = arith.subf %72, %71 : vector<8x64xf32>
    %74 = arith.mulf %53, %73 : vector<8x64xf32>
    %c0_38 = arith.constant 0 : index
    %c0_39 = arith.constant 0 : index
    %75 = vector.load %arg7[%c0_38, %c0_39] : memref<8x64xf32, #tpu.memory_space<vmem>>, vector<8x64xf32>
    %76 = math.log %75 : vector<8x64xf32>
    %cst_40 = arith.constant -1.000000e+02 : f32
    %77 = vector.broadcast %cst_40 : f32 to vector<8x64xf32>
    %78 = arith.maximumf %76, %77 : vector<8x64xf32>
    %cst_41 = arith.constant 1.000000e+00 : f32
    %79 = vector.broadcast %cst_41 : f32 to vector<8x64xf32>
    %80 = arith.subf %79, %75 : vector<8x64xf32>
    %81 = math.log %80 : vector<8x64xf32>
    %cst_42 = arith.constant -1.000000e+02 : f32
    %82 = vector.broadcast %cst_42 : f32 to vector<8x64xf32>
    %83 = arith.maximumf %81, %82 : vector<8x64xf32>
    %84 = arith.mulf %49, %78 : vector<8x64xf32>
    %cst_43 = arith.constant 1.000000e+00 : f32
    %85 = vector.broadcast %cst_43 : f32 to vector<8x64xf32>
    %86 = arith.subf %85, %49 : vector<8x64xf32>
    %87 = arith.mulf %86, %83 : vector<8x64xf32>
    %88 = arith.addf %84, %87 : vector<8x64xf32>
    %cst_44 = arith.constant 0.000000e+00 : f32
    %89 = vector.broadcast %cst_44 : f32 to vector<8x64xf32>
    %90 = arith.subf %89, %88 : vector<8x64xf32>
    %91 = arith.mulf %57, %90 : vector<8x64xf32>
    %92 = arith.addf %74, %91 : vector<8x64xf32>
    %c0_45 = arith.constant 0 : index
    %c0_46 = arith.constant 0 : index
    %93 = vector.load %arg10[%c0_45, %c0_46] : memref<8x64xf32, #tpu.memory_space<vmem>>, vector<8x64xf32>
    %94 = arith.mulf %92, %93 : vector<8x64xf32>
    %cst_47 = arith.constant dense<0.000000e+00> : vector<8xf32>
    %95 = vector.multi_reduction <add>, %94, %cst_47 [1] : vector<8x64xf32> to vector<8xf32>
    %96 = vector.shape_cast %95 : vector<8xf32> to vector<8x1xf32>
    %97 = arith.mulf %96, %8 : vector<8x1xf32>
    %cst_48 = arith.constant 2.500000e-01 : f32
    %98 = vector.broadcast %cst_48 : f32 to vector<8x1xf32>
    %99 = arith.mulf %97, %98 : vector<8x1xf32>
    %cst_49 = arith.constant 1.000000e-01 : f32
    %100 = vector.broadcast %cst_49 : f32 to vector<8x1xf32>
    %101 = arith.mulf %100, %47 : vector<8x1xf32>
    %cst_50 = arith.constant 0.899999976 : f32
    %102 = vector.broadcast %cst_50 : f32 to vector<8x1xf32>
    %103 = arith.mulf %102, %99 : vector<8x1xf32>
    %104 = arith.addf %101, %103 : vector<8x1xf32>
    %cst_51 = arith.constant dense<0.000000e+00> : vector<1xf32>
    %105 = vector.multi_reduction <add>, %104, %cst_51 [0] : vector<8x1xf32> to vector<1xf32>
    %106 = vector.shape_cast %105 : vector<1xf32> to vector<1x1xf32>
    %c0_52 = arith.constant 0 : index
    %c0_53 = arith.constant 0 : index
    %c0_54 = arith.constant 0 : index
    %107 = vector.load %arg11[%c0_52, %c0_53, %c0_54] : memref<1x1x1xf32, #tpu.memory_space<vmem>>, vector<1x1x1xf32>
    %108 = vector.shape_cast %107 : vector<1x1x1xf32> to vector<1x1xf32>
    %109 = vector.shape_cast %106 : vector<1x1xf32> to vector<1x1x1xf32>
    tpu.vector_store %arg11[%c0_52, %c0_53, %c0_54], %109 {strides = array<i32>} : memref<1x1x1xf32, #tpu.memory_space<vmem>>, vector<1x1x1xf32>,
    return
  }
  func.func @transform_0(%arg0: i32) -> (i32, i32) {
    %c0_i32 = arith.constant 0 : i32
    %c0_i32_0 = arith.constant 0 : i32
    return %arg0, %c0_i32 : i32, i32
  }
  func.func @transform_1(%arg0: i32) -> (i32, i32) {
    %c0_i32 = arith.constant 0 : i32
    %c0_i32_0 = arith.constant 0 : i32
    return %arg0, %c0_i32 : i32, i32
  }
  func.func @transform_2(%arg0: i32) -> (i32, i32) {
    %c0_i32 = arith.constant 0 : i32
    %c0_i32_0 = arith.constant 0 : i32
    return %arg0, %c0_i32 : i32, i32
  }
  func.func @transform_3(%arg0: i32) -> (i32, i32) {
    %c0_i32 = arith.constant 0 : i32
    %c0_i32_0 = arith.constant 0 : i32
    return %arg0, %c0_i32 : i32, i32
  }
  func.func @transform_4(%arg0: i32) -> (i32, i32) {
    %c0_i32 = arith.constant 0 : i32
    %c0_i32_0 = arith.constant 0 : i32
    return %arg0, %c0_i32 : i32, i32
  }
  func.func @transform_5(%arg0: i32) -> (i32, i32) {
    %c0_i32 = arith.constant 0 : i32
    %c0_i32_0 = arith.constant 0 : i32
    return %arg0, %c0_i32 : i32, i32
  }
  func.func @transform_6(%arg0: i32) -> (i32, i32) {
    %c0_i32 = arith.constant 0 : i32
    %c0_i32_0 = arith.constant 0 : i32
    return %arg0, %c0_i32 : i32, i32
  }
  func.func @transform_7(%arg0: i32) -> (i32, i32) {
    %c0_i32 = arith.constant 0 : i32
    %c0_i32_0 = arith.constant 0 : i32
    return %arg0, %c0_i32 : i32, i32
  }
  func.func @transform_8(%arg0: i32) -> (i32, i32) {
    %c0_i32 = arith.constant 0 : i32
    %c0_i32_0 = arith.constant 0 : i32
    return %arg0, %c0_i32 : i32, i32
  }
  func.func @transform_9(%arg0: i32) -> (i32, i32) {
    %c0_i32 = arith.constant 0 : i32
    %c0_i32_0 = arith.constant 0 : i32
    return %arg0, %c0_i32 : i32, i32
  }
  func.func @transform_10(%arg0: i32) -> (i32, i32, i32) {
    %c0_i32 = arith.constant 0 : i32
    %c0_i32_0 = arith.constant 0 : i32
    %c0_i32_1 = arith.constant 0 : i32
    return %arg0, %c0_i32, %c0_i32_0 : i32, i32, i32
  }
}

</mosaic_0001>

<bundles_post_ra>
// kernel: tpu_custom_call.1
= control target key start
LH: loop header
LB: loop body
LE: loop exit
PB: predicated region body
PF: predicated region fallthrough
CT: control target
= control target key end

     0   :  { %15 = vsyncpa [#allocation3], 0  ;;  %s572_s0 = inlined_call_operand.hbm [shape: f32[8,16], index: 0, kind: input, shape index: {}]   ;;  %s573_s1 = inlined_call_operand.hbm [shape: f32[8,16], index: 1, kind: input, shape index: {}]   ;;  %s574_s2 = inlined_call_operand.hbm [shape: f32[8,16], index: 2, kind: input, shape index: {}]   ;;  %s575_s3 = inlined_call_operand.vmem [shape: f32[8,16], index: 3, kind: input, shape index: {}]   ;;  %s576_s4 = inlined_call_operand.hbm [shape: f32[8,16], index: 4, kind: input, shape index: {}]   ;;  %s577_s5 = inlined_call_operand.vmem [shape: f32[8,64], index: 5, kind: input, shape index: {}]   ;;  %s578_s6 = inlined_call_operand.hbm [shape: f32[8,64], index: 6, kind: input, shape index: {}]   ;;  %s579_s7 = inlined_call_operand.vmem [shape: f32[8,64], index: 7, kind: input, shape index: {}]   ;;  %s580_s8 = inlined_call_operand.hbm [shape: f32[8,64], index: 8, kind: input, shape index: {}]   ;;  %s581_s9 = inlined_call_operand.vmem [shape: f32[8,64], index: 9, kind: input, shape index: {}]   ;;  %s582_s10 = inlined_call_operand.hbm [shape: f32[1,1,1], index: 10, kind: output, shape index: {}]  }
   0x1   :  { %16 = vsyncpa [#allocation6], 0 }
   0x2   :  { %17 = vsyncpa [#allocation9], 0 }
   0x3   :  { %18 = vsyncpa [#allocation12], 0 }
   0x4   :  { %19 = vsyncpa [#allocation4], 0  ;;  %s408_s13 = smov [#allocation5]   ;;  %s409_s15 = smov [#allocation8]  }
   0x5   :  { %s36_s14 = sshll.u32 %s408_s13, 4  ;;  %s58_s16 = sshll.u32 %s409_s15, 4  ;;  %s37_s14 = int_to_ptr.vmem [resolvable:$true] %s36_s14  ;;  %s59_s16 = int_to_ptr.vmem [resolvable:$true] %s58_s16 }
   0x6   :  { %s244_s19 = scalar_lea.hbm %s573_s1, 128 }
   0x7   :  { %p245_p0 = scmp.ne.s32.totalorder %s573_s1, %s244_s19  ;;  %p248_p1 = scmp.lt.u32.totalorder %s244_s19, %s573_s1 }
   0x9   :  { %p250_p2 = pnand %p248_p1, %p245_p0 }
   0xb   :  { %253 = shalt.err (!%p250_p2)
}
   0xc   :  { %s254_s24 = scalar_lea.vmem %s37_s14, 128  ;;  %p259_p4 = scmp.lt.s32.totalorder %s37_s14, %s37_s14 }
   0xd   :  { %p255_p3 = scmp.ne.s32.totalorder %s37_s14, %s254_s24  ;;  %p260_p5 = scmp.lt.s32.totalorder %s254_s24, %s254_s24 }
   0xf   :  { %p261_p6 = por %p260_p5, %p259_p4 }
  0x11   :  { %p262_p7 = pnand %p261_p6, %p255_p3 }
  0x13   :  { %265 = shalt.err (!%p262_p7)
}
  0x14   :  { %39 = dma.hbm_to_vmem [thread:$0]  %s573_s1, 128, %s37_s14, [#allocation6]  }
  0x15   :  { %s266_s29 = scalar_lea.hbm %s576_s4, 128 }
  0x16   :  { %p267_p8 = scmp.ne.s32.totalorder %s576_s4, %s266_s29  ;;  %p270_p9 = scmp.lt.u32.totalorder %s266_s29, %s576_s4 }
  0x18   :  { %p272_p10 = pnand %p270_p9, %p267_p8 }
  0x1a   :  { %275 = shalt.err (!%p272_p10)
}
  0x1b   :  { %s276_s15 = scalar_lea.vmem %s59_s16, 128  ;;  %p281_p12 = scmp.lt.s32.totalorder %s59_s16, %s59_s16 }
  0x1c   :  { %p277_p11 = scmp.ne.s32.totalorder %s59_s16, %s276_s15  ;;  %p282_p13 = scmp.lt.s32.totalorder %s276_s15, %s276_s15 }
  0x1e   :  { %p283_p0 = por %p282_p13, %p281_p12 }
  0x20   :  { %p284_p1 = pnand %p283_p0, %p277_p11 }
  0x22   :  { %287 = shalt.err (!%p284_p1)
}
  0x23   :  { %61 = dma.hbm_to_vmem [thread:$0]  %s576_s4, 128, %s59_s16, [#allocation9]  }
  0x24   :  { %s410_s17 = smov [#allocation2]   ;;  %s411_s19 = smov [#allocation7]  }
  0x25   :  { %s26_s18 = sshll.u32 %s410_s17, 4  ;;  %s46_s20 = sshll.u32 %s411_s19, 4  ;;  %s27_s18 = int_to_ptr.vmem [resolvable:$true] %s26_s18  ;;  %s47_s20 = int_to_ptr.vmem [resolvable:$true] %s46_s20 }
  0x26   :  { %s288_s23 = scalar_lea.hbm %s572_s0, 128 }
  0x27   :  { %p289_p2 = scmp.ne.s32.totalorder %s572_s0, %s288_s23  ;;  %p292_p3 = scmp.lt.u32.totalorder %s288_s23, %s572_s0 }
  0x29   :  { %p294_p4 = pnand %p292_p3, %p289_p2 }
  0x2b   :  { %297 = shalt.err (!%p294_p4)
}
  0x2c   :  { %s298_s4 = scalar_lea.vmem %s27_s18, 128  ;;  %p303_p6 = scmp.lt.s32.totalorder %s27_s18, %s27_s18 }
  0x2d   :  { %p299_p5 = scmp.ne.s32.totalorder %s27_s18, %s298_s4  ;;  %p304_p7 = scmp.lt.s32.totalorder %s298_s4, %s298_s4 }
  0x2f   :  { %p305_p8 = por %p304_p7, %p303_p6 }
  0x31   :  { %p306_p9 = pnand %p305_p8, %p299_p5 }
  0x33   :  { %309 = shalt.err (!%p306_p9)
}
  0x34   :  { %29 = dma.hbm_to_vmem [thread:$0]  %s572_s0, 128, %s27_s18, [#allocation3]  }
  0x35   :  { %s310_s11 = scalar_lea.hbm %s574_s2, 128 }
  0x36   :  { %p311_p10 = scmp.ne.s32.totalorder %s574_s2, %s310_s11  ;;  %p314_p11 = scmp.lt.u32.totalorder %s310_s11, %s574_s2 }
  0x38   :  { %p316_p12 = pnand %p314_p11, %p311_p10 }
  0x3a   :  { %319 = shalt.err (!%p316_p12)
}
  0x3b   :  { %s320_s14 = scalar_lea.vmem %s47_s20, 128  ;;  %p325_p0 = scmp.lt.s32.totalorder %s47_s20, %s47_s20 }
  0x3c   :  { %p321_p13 = scmp.ne.s32.totalorder %s47_s20, %s320_s14  ;;  %p326_p1 = scmp.lt.s32.totalorder %s320_s14, %s320_s14 }
  0x3e   :  { %p327_p2 = por %p326_p1, %p325_p0 }
  0x40   :  { %p328_p3 = pnand %p327_p2, %p321_p13 }
  0x42   :  { %331 = shalt.err (!%p328_p3)
}
  0x43   :  { %49 = dma.hbm_to_vmem [thread:$0]  %s574_s2, 128, %s47_s20, [#allocation6]  }
  0x44   :  { %s412_s18 = smov [#allocation10]   ;;  %s413_s21 = smov [#allocation11]  }
  0x45   :  { %s70_s19 = sshll.u32 %s412_s18, 4  ;;  %s82_s22 = sshll.u32 %s413_s21, 4  ;;  %s71_s19 = int_to_ptr.vmem [resolvable:$true] %s70_s19  ;;  %s83_s22 = int_to_ptr.vmem [resolvable:$true] %s82_s22 }
  0x46   :  { %s332_s25 = scalar_lea.hbm %s578_s6, 128 }
  0x47   :  { %p333_p4 = scmp.ne.s32.totalorder %s578_s6, %s332_s25  ;;  %p336_p5 = scmp.lt.u32.totalorder %s332_s25, %s578_s6 }
  0x49   :  { %p338_p6 = pnand %p336_p5, %p333_p4 }
  0x4b   :  { %341 = shalt.err (!%p338_p6)
}
  0x4c   :  { %s342_s2 = scalar_lea.vmem %s71_s19, 128  ;;  %p347_p8 = scmp.lt.s32.totalorder %s71_s19, %s71_s19 }
  0x4d   :  { %p343_p7 = scmp.ne.s32.totalorder %s71_s19, %s342_s2  ;;  %p348_p9 = scmp.lt.s32.totalorder %s342_s2, %s342_s2 }
  0x4f   :  { %p349_p10 = por %p348_p9, %p347_p8 }
  0x51   :  { %p350_p11 = pnand %p349_p10, %p343_p7 }
  0x53   :  { %353 = shalt.err (!%p350_p11)
}
  0x54   :  { %73 = dma.hbm_to_vmem [thread:$0]  %s578_s6, 128, %s71_s19, [#allocation9]  }
  0x55   :  { %s354_s11 = scalar_lea.hbm %s580_s8, 128 }
  0x56   :  { %p355_p12 = scmp.ne.s32.totalorder %s580_s8, %s354_s11  ;;  %p358_p13 = scmp.lt.u32.totalorder %s354_s11, %s580_s8 }
  0x58   :  { %p360_p0 = pnand %p358_p13, %p355_p12 }
  0x5a   :  { %363 = shalt.err (!%p360_p0)
}
  0x5b   :  { %s364_s14 = scalar_lea.vmem %s83_s22, 128  ;;  %p369_p2 = scmp.lt.s32.totalorder %s83_s22, %s83_s22 }
  0x5c   :  { %p365_p1 = scmp.ne.s32.totalorder %s83_s22, %s364_s14  ;;  %p370_p3 = scmp.lt.s32.totalorder %s364_s14, %s364_s14 }
  0x5e   :  { %p371_p4 = por %p370_p3, %p369_p2 }
  0x60   :  { %p372_p5 = pnand %p371_p4, %p365_p1 }
  0x62   :  { %375 = shalt.err (!%p372_p5)
}
  0x63   :  { %85 = dma.hbm_to_vmem [thread:$0]  %s580_s8, 128, %s83_s22, [#allocation12]  }
  0x64   :  { %398 = dma.done.wait [#allocation3], 128  }
  0x65   :  { %399 = vsyncadd [#allocation3], 4294967168 }
  0x66   :  { %400 = dma.done.wait [#allocation6], 256  }
  0x67   :  { %401 = vsyncadd [#allocation6], 4294967040 }
  0x68   :  { %402 = dma.done.wait [#allocation9], 256  }
  0x69   :  { %403 = vsyncadd [#allocation9], 4294967040 }
  0x6a   :  { %404 = dma.done.wait [#allocation12], 128  }
  0x6b   :  { %405 = vsyncadd [#allocation12], 4294967168  ;;  %vm107_vm0 = vcmask 130048   ;;  %v542_v0 = vld [vmem:[#allocation8] sm:$0xff]  ;;  %v115_v1 = vld [vmem:[#allocation2] sm:$0xff]  ;;  %vm184_vm1 = vcmask 523264  }
  0x6c   :  { %v108_v2 = vsel %vm107_vm0, %v542_v0, 0.0  ;;  %226 = vlog2.f32 %v115_v1  ;;  %v120_v3 = vsub.f32 1.0, %v115_v1  ;;  %v129_v4 = vld [vmem:[#allocation5] sm:$0xff]  ;;  %v153_v6 = vld [vmem:[%s577_s5] sm:$0xff]  ;;  %v116_v11 = vld [vmem:[#allocation7] sm:$0xff]  ;;  %vm199_vm3 = vcmask 0  }
  0x6d   :  { %109 = vadd.xlane.f32.xlu0 %v108_v2  ;;  %228 = vlog2.f32 %v129_v4  ;;  %v134_v5 = vsub.f32 1.0, %v129_v4  ;;  %v167_v7 = vld [vmem:[#allocation10] sm:$0xff]  ;;  %v157_v8 = vsub.f32 1.0, %v153_v6  ;;  %v125_v20 = vsub.f32 1.0, %v116_v11  ;;  %v150_v29 = vld [vmem:[#allocation11] sm:$0xff] }
  0x6e   :  { %230 = vlog2.f32 %v120_v3  ;;  %v171_v9 = vsub.f32 1.0, %v167_v7  ;;  %v130_v14 = vld [vmem:[%s575_s3] sm:$0xff]  ;;  %v176_v43 = vsub.f32 1.0, %v150_v29  ;;  %v152_v57 = vadd.f32 1.0, %v150_v29 }
  0x6f   :  { %232 = vlog2.f32 %v134_v5  ;;  %v149_v21 = vld [vmem:[%s579_s7] sm:$0xff]  ;;  %v139_v25 = vsub.f32 1.0, %v130_v14 }
  0x70   :  { %234 = vlog2.f32 %v153_v6  ;;  %v162_v35 = vsub.f32 1.0, %v149_v21  ;;  %v151_v53 = vadd.f32 1.0, %v149_v21  ;;  %v182_v2 = vld [vmem:[%s581_s9] sm:$0xff]  ;;  %s414_s9 = smov [#allocation13]  }
  0x71   :  { %236 = vlog2.f32 %v157_v8  ;;  %s207_s22 = sshll.u32 %s414_s9, 4  ;;  %s208_s22 = int_to_ptr.vmem [resolvable:$true] %s207_s22 }
  0x72   :  { %238 = vlog2.f32 %v167_v7  ;;  %s376_s23 = scalar_lea.vmem %s208_s22, 16  ;;  %s380_s24 = scalar_lea.vmem %s208_s22, 32 }
  0x73   :  { %240 = vlog2.f32 %v171_v9  ;;  %p377_p6 = scmp.ne.s32.totalorder %s208_s22, %s376_s23  ;;  %p381_p7 = scmp.lt.s32.totalorder %s208_s22, %s208_s22 }
  0x74   :  { %p382_p8 = scmp.lt.s32.totalorder %s380_s24, %s376_s23 }
  0x76   :  { %v227_v10 = vpop.eup %226  ;;  %p383_p9 = por %p382_p8, %p381_p7 }
  0x77   :  { %v229_v12 = vpop.eup %228  ;;  %v118_v13 = vmul.f32 0.6931472, %v227_v10 }
  0x78   :  { %v231_v15 = vpop.eup %230  ;;  %v132_v16 = vmul.f32 0.6931472, %v229_v12  ;;  %p384_p10 = pnand %p383_p9, %p377_p6 }
  0x79   :  { %v233_v17 = vpop.eup %232  ;;  %v119_v18 = vmax.f32 %v118_v13, -100.0  ;;  %v122_v19 = vmul.f32 0.6931472, %v231_v15 }
  0x7a   :  { %v235_v22 = vpop.eup %234  ;;  %v133_v23 = vmax.f32 %v132_v16, -100.0  ;;  %v136_v24 = vmul.f32 0.6931472, %v233_v17 }
  0x7b   :  { %v237_v26 = vpop.eup %236  ;;  %v123_v27 = vmax.f32 %v122_v19, -100.0  ;;  %v124_v28 = vmul.f32 %v119_v18, %v116_v11  ;;  %v155_v30 = vmul.f32 0.6931472, %v235_v22 }
  0x7c   :  { %v239_v31 = vpop.eup %238  ;;  %v137_v32 = vmax.f32 %v136_v24, -100.0  ;;  %v138_v33 = vmul.f32 %v133_v23, %v130_v14  ;;  %v159_v34 = vmul.f32 0.6931472, %v237_v26 }
  0x7d   :  { %v241_v36 = vpop.eup %240  ;;  %v126_v37 = vmul.f32 %v125_v20, %v123_v27  ;;  %v156_v38 = vmax.f32 %v155_v30, -100.0  ;;  %v169_v39 = vmul.f32 0.6931472, %v239_v31 }
  0x7e   :  { %v140_v40 = vmul.f32 %v139_v25, %v137_v32  ;;  %v160_v41 = vmax.f32 %v159_v34, -100.0  ;;  %v173_v42 = vmul.f32 0.6931472, %v241_v36 }
  0x7f   :  { %v127_v44 = vadd.f32 %v126_v37, %v124_v28  ;;  %v161_v45 = vmul.f32 %v156_v38, %v149_v21  ;;  %v170_v46 = vmax.f32 %v169_v39, -100.0 }
  0x80   :  { %v141_v47 = vadd.f32 %v140_v40, %v138_v33  ;;  %v163_v48 = vmul.f32 %v162_v35, %v160_v41  ;;  %v174_v49 = vmax.f32 %v173_v42, -100.0 }
  0x81   :  { %v128_v50 = vsub.f32 0.0, %v127_v44  ;;  %v175_v51 = vmul.f32 %v170_v46, %v150_v29 }
  0x82   :  { %v142_v52 = vsub.f32 0.0, %v141_v47  ;;  %v164_v54 = vadd.f32 %v163_v48, %v161_v45  ;;  %v177_v55 = vmul.f32 %v176_v43, %v174_v49 }
  0x84   :  { %v143_v56 = vadd.f32 %v142_v52, %v128_v50  ;;  %v165_v58 = vsub.f32 0.0, %v164_v54  ;;  %v178_v59 = vadd.f32 %v177_v55, %v175_v51 }
  0x86   :  { %v144_v60 = vmul.f32 %v143_v56, %v542_v0  ;;  %v166_v61 = vmul.f32 %v165_v58, %v151_v53  ;;  %v179_v62 = vsub.f32 0.0, %v178_v59 }
  0x88   :  { %v145_v63 = vsel %vm107_vm0, %v144_v60, 0.0  ;;  %v180_v1 = vmul.f32 %v179_v62, %v152_v57 }
  0x89   :  { %146 = vadd.xlane.f32.xlu1 %v145_v63 }
  0x8a   :  { %v181_v3 = vadd.f32 %v180_v1, %v166_v61 }
  0x8c   :  { %v183_v4 = vmul.f32 %v182_v2, %v181_v3 }
  0x8e   :  { %v185_v5 = vsel %vm184_vm1, %v183_v4, 0.0 }
  0x8f   :  { %186 = vadd.xlane.f32.xlu0 %v185_v5 }
  0xfa   :  { %v110_v6 = vpop.xlane.xlu0 %109 }
  0xfb   :  { %242 = vrcp.f32 %v110_v6  ;;  %vm111_vm2 = vcmp.gt.f32.partialorder %v110_v6, 0.0 }
 0x105   :  { %v243_v7 = vpop.eup %242 }
 0x106   :  { %v114_v8 = vsel %vm111_vm2, %v243_v7, 0.0 }
 0x116   :  { %v147_v0 = vpop.xlane.xlu1 %146 }
 0x117   :  { %v148_v10 = vmul.f32 %v147_v0, %v114_v8 }
 0x119   :  { %v190_v13 = vmul.f32 0.1, %v148_v10 }
 0x11c   :  { %v187_v9 = vpop.xlane.xlu0 %186 }
 0x11d   :  { %v188_v11 = vmul.f32 %v187_v9, %v114_v8 }
 0x11f   :  { %v189_v12 = vmul.f32 0.25, %v188_v11 }
 0x121   :  { %v191_v14 = vmul.f32 0.9, %v189_v12 }
 0x123   :  { %v192_v15 = vadd.f32 %v191_v14, %v190_v13 }
 0x125   :  { %v193_v16 = vrot.slane %v192_v15, 4 }
 0x127   :  { %v194_v17 = vadd.f32 %v193_v16, %v192_v15 }
 0x129   :  { %v195_v18 = vrot.slane %v194_v17, 2 }
 0x12b   :  { %v196_v19 = vadd.f32 %v195_v18, %v194_v17 }
 0x12d   :  { %v197_v20 = vrot.slane %v196_v19, 1 }
 0x12f   :  { %v198_v21 = vadd.f32 %v197_v20, %v196_v19 }
 0x131   :  { %200 = vst.msk [vmem:[#allocation13] sm:$0x1] %vm199_vm3, %v198_v21 }
 0x132   :  { %387 = shalt.err (!%p384_p10)
}
 0x133   :  { %s388_s27 = scalar_lea.hbm %s582_s10, 16 }
 0x134   :  { %p389_p11 = scmp.ne.s32.totalorder %s582_s10, %s388_s27  ;;  %p392_p12 = scmp.lt.u32.totalorder %s388_s27, %s582_s10 }
 0x136   :  { %p394_p13 = pnand %p392_p12, %p389_p11 }
 0x138   :  { %397 = shalt.err (!%p394_p13)
}
 0x139   :  { %210 = dma.vmem_to_hbm [thread:$0]  %s208_s22, 16, %s582_s10, [#allocation4]  }
 0x13a   :  { %406 = dma.done.wait [#allocation4], 16  }
 0x13b   :  { %407 = vsyncadd [#allocation4], 4294967280 }
 0x13c   :  { %214 = vsyncpa [#allocation3], 1 }
 0x13d   :  { %215 = vsyncpa [#allocation6], 1 }
 0x13e   :  { %216 = vsyncpa [#allocation9], 1 }
 0x13f   :  { %217 = vsyncpa [#allocation12], 1 }
 0x140   :  { %218 = vsyncpa [#allocation4], 1 }

</bundles_post_ra>
